<compile_context>
chip_gen: v7x
topology: tpu7x:2x2x1
jax: 0.10.0
libtpu: 0.0.40
codegen_flags: <defaults>
</compile_context>

<pallas_src>
import jax
import jax.numpy as jnp
from jax.experimental import pallas as pl
from jax.experimental.pallas import tpu as pltpu


def _round_up(v, mult):
    return ((v + mult - 1) // mult) * mult


def _erf(x):
    # Abramowitz & Stegun 7.1.26 rational approximation (|err| <= 1.5e-7).
    # exp + reciprocal go to the EUP slot; the rest is VALU mul/add/select.
    p = 0.3275911
    a1, a2, a3, a4, a5 = (0.254829592, -0.284496736, 1.421413741,
                          -1.453152027, 1.061405429)
    ax = jnp.abs(x)
    t = pl.reciprocal(1.0 + p * ax, approx=True)    # EUP, not a VALU divide
    poly = ((((a5 * t + a4) * t + a3) * t + a2) * t + a1) * t
    y = 1.0 - poly * jnp.exp(-ax * ax)
    return jnp.where(x >= 0, y, -y)


def _gelu_exact(x):
    # PyTorch nn.GELU() default (approximate='none'): 0.5*x*(1 + erf(x/sqrt(2)))
    return 0.5 * x * (1.0 + _erf(x * 0.7071067811865476))


def _ffn_kernel(x_ref, w1_ref, b1_ref, w2_ref, b2_ref, o_ref, acc_ref):
    # Grid = (row_tiles [parallel], hidden_tiles [arbitrary, reduction]).
    k = pl.program_id(1)

    @pl.when(k == 0)
    def _():
        acc_ref[...] = jnp.zeros_like(acc_ref)

    # (bm, dim)bf16 @ (dim, th)bf16 -> f32, + b1 chunk, exact GELU (f32 VPU/EUP)
    h = jnp.dot(x_ref[...], w1_ref[...], preferred_element_type=jnp.float32)
    h = _gelu_exact(h + b1_ref[...])

    # (bm, th)bf16 @ (th, dim)bf16 accumulated into f32 scratch
    acc_ref[...] += jnp.dot(h.astype(w2_ref.dtype), w2_ref[...],
                            preferred_element_type=jnp.float32)

    @pl.when(k == pl.num_programs(1) - 1)
    def _():
        o_ref[...] = (acc_ref[...] + b2_ref[...]).astype(o_ref.dtype)


def feedforward(x, params, *, block_rows=512, hidden_block=512):
    """x: (..., dim) -> (..., dim). Fused Linear -> GELU -> Linear."""
    w1, b1, w2, b2 = params["w1"], params["b1"], params["w2"], params["b2"]
    dim, hidden = w1.shape

    orig_shape = x.shape
    x2 = x.reshape(-1, dim)                      # fold batch/seq into rows
    m = x2.shape[0]

    # ---- row tile (parallel axis) ------------------------------------------
    if m <= 8:
        bm = m                                   # full-extent block: no 8-rule
    else:
        bm = min(block_rows, _round_up(m, 8))
        if pl.cdiv(m, bm) < 2:
            # Give v7x's 2 TensorCores work: split into (at least) 2 row tiles.
            half = _round_up(pl.cdiv(m, 2), 8)
            if half < m:
                bm = half
    grid_m = pl.cdiv(m, bm)

    # ---- hidden tile (reduction axis; must divide hidden exactly) ----------
    if hidden <= hidden_block:
        th = hidden
    else:
        th = hidden                              # fallback: untiled
        cand = (hidden_block // 128) * 128
        while cand >= 128:
            if hidden % cand == 0:
                th = cand
                break
            cand -= 128
    grid_k = hidden // th

    # ---- cast matmul operands to bf16 (f32 accumulation inside) ------------
    x2b = x2.astype(jnp.bfloat16)
    w1b = w1.astype(jnp.bfloat16)
    w2b = w2.astype(jnp.bfloat16)
    b1f = b1.astype(jnp.float32)
    b2f = b2.astype(jnp.float32)

    # ---- VMEM budget / cost estimate ----------------------------------------
    out_bytes = jnp.dtype(x.dtype).itemsize
    footprint = (
        2 * bm * dim * 2            # x tile (bf16, double-buffered)
        + 2 * dim * th * 2          # w1 tile
        + 2 * 8 * th * 4            # b1 tile (padded to 8 sublanes)
        + 2 * th * dim * 2          # w2 tile
        + 2 * 8 * dim * 4           # b2 tile
        + 2 * bm * dim * out_bytes  # out tile
        + bm * dim * 4              # f32 accumulator scratch
    )
    vmem_limit = int(footprint * 1.5) + (4 << 20)
    vmem_limit = max(32 << 20, min(vmem_limit, 64 << 20))   # safe on v7x too

    cost = pl.CostEstimate(
        flops=4 * m * dim * hidden,              # two matmuls
        transcendentals=2 * m * hidden,          # exp + reciprocal per element
        bytes_accessed=(m * dim * 2 + dim * hidden * 2 + hidden * dim * 2
                        + hidden * 4 + dim * 4 + m * dim * out_bytes),
    )

    out = pl.pallas_call(
        _ffn_kernel,
        out_shape=jax.ShapeDtypeStruct((m, dim), x.dtype),
        grid=(grid_m, grid_k),
        in_specs=[
            pl.BlockSpec((bm, dim), lambda i, k: (i, 0)),
            pl.BlockSpec((dim, th), lambda i, k: (0, k)),
            pl.BlockSpec((1, th), lambda i, k: (0, k)),
            pl.BlockSpec((th, dim), lambda i, k: (k, 0)),
            pl.BlockSpec((1, dim), lambda i, k: (0, 0)),
        ],
        out_specs=pl.BlockSpec((bm, dim), lambda i, k: (i, 0)),
        scratch_shapes=[pltpu.VMEM((bm, dim), jnp.float32)],
        compiler_params=pltpu.CompilerParams(
            dimension_semantics=("parallel", "arbitrary"),
            vmem_limit_bytes=vmem_limit),
        cost_estimate=cost,
    )(x2b, w1b, b1f, w2b, b2f)

    return out.reshape(orig_shape)


if __name__ == "__main__":
    # dim / hidden kept lane-dense (multiples of 128).  Note: on v6e/v7x the
    # MXU is 256 wide, so production dims should ideally be multiples of 256.
    B, S, DIM, HIDDEN = 2, 16, 128, 256
    key = jax.random.PRNGKey(0)
    kx, k1, k2, k3, k4 = jax.random.split(key, 5)

    x = jax.random.normal(kx, (B, S, DIM), jnp.float32)
    lim1 = 1.0 / (DIM ** 0.5)
    lim2 = 1.0 / (HIDDEN ** 0.5)
    params = {
        "w1": jax.random.uniform(k1, (DIM, HIDDEN), jnp.float32, -lim1, lim1),
        "b1": jax.random.uniform(k2, (1, HIDDEN), jnp.float32, -lim1, lim1),
        "w2": jax.random.uniform(k3, (HIDDEN, DIM), jnp.float32, -lim2, lim2),
        "b2": jax.random.uniform(k4, (1, DIM), jnp.float32, -lim2, lim2),
    }

    fwd = jax.jit(feedforward)
    y = jax.block_until_ready(fwd(x, params))

    # Pure-JAX reference (exact-erf GELU, matching nn.GELU() default).
    def ref(xv, p):
        h = jnp.dot(xv, p["w1"], precision=jax.lax.Precision.HIGHEST) + p["b1"][0]
        h = jax.nn.gelu(h, approximate=False)
        return jnp.dot(h, p["w2"], precision=jax.lax.Precision.HIGHEST) + p["b2"][0]

    y_ref = ref(x, params)
    assert y.shape == (B, S, DIM), y.shape
    assert bool(jnp.all(jnp.isfinite(y)))
    max_err = float(jnp.max(jnp.abs(y - y_ref)))
    assert max_err < 2e-2, f"mismatch vs reference: {max_err}"
    print("KERNEL_OK")
</pallas_src>

<mosaic_0001>
module attributes {stable_mosaic.version = 11 : i64} {
  func.func @_ffn_kernel(%arg0: i32, %arg1: i32, %arg2: memref<16x128xbf16, #tpu.memory_space<vmem>>, %arg3: memref<128x256xbf16, #tpu.memory_space<vmem>>, %arg4: memref<1x256xf32, #tpu.memory_space<vmem>>, %arg5: memref<256x128xbf16, #tpu.memory_space<vmem>>, %arg6: memref<1x128xf32, #tpu.memory_space<vmem>>, %arg7: memref<16x128xf32, #tpu.memory_space<vmem>>, %arg8: memref<16x128xf32, #tpu.memory_space<vmem>>) attributes {dimension_semantics = [#tpu.dimension_semantics<parallel>, #tpu.dimension_semantics<arbitrary>], iteration_bounds = array<i64: 2, 1>, scalar_prefetch = 0 : i64, scratch_operands = 1 : i64, tpu.core_type = #tpu.core_type<tc>, window_params = [{transform_indices = @transform_0, window_bounds = array<i64: 16, 128>}, {transform_indices = @transform_1, window_bounds = array<i64: 128, 256>}, {transform_indices = @transform_2, window_bounds = array<i64: 1, 256>}, {transform_indices = @transform_3, window_bounds = array<i64: 256, 128>}, {pipeline_mode = #tpu.pipeline_mode<synchronous>, transform_indices = @transform_4, window_bounds = array<i64: 1, 128>}, {transform_indices = @transform_5, window_bounds = array<i64: 16, 128>}]} {
    %c0_i32 = arith.constant 0 : i32
    %0 = arith.cmpi eq, %arg1, %c0_i32 : i32
    %1 = arith.extui %0 : i1 to i32
    %c0_i32_0 = arith.constant 0 : i32
    %2 = arith.cmpi ne, %1, %c0_i32_0 : i32
    scf.if %2 {
      %cst_29 = arith.constant 0.000000e+00 : f32
      %57 = vector.broadcast %cst_29 : f32 to vector<16x128xf32>
      %c0_30 = arith.constant 0 : index
      %c0_31 = arith.constant 0 : index
      %58 = vector.load %arg8[%c0_30, %c0_31] : memref<16x128xf32, #tpu.memory_space<vmem>>, vector<16x128xf32>
      tpu.vector_store %arg8[%c0_30, %c0_31], %57 {strides = array<i32>} : memref<16x128xf32, #tpu.memory_space<vmem>>, vector<16x128xf32>,
    } else {
    }
    %c0 = arith.constant 0 : index
    %c0_1 = arith.constant 0 : index
    %3 = vector.load %arg2[%c0, %c0_1] : memref<16x128xbf16, #tpu.memory_space<vmem>>, vector<16x128xbf16>
    %c0_2 = arith.constant 0 : index
    %c0_3 = arith.constant 0 : index
    %4 = vector.load %arg3[%c0_2, %c0_3] : memref<128x256xbf16, #tpu.memory_space<vmem>>, vector<128x256xbf16>
    %cst = arith.constant dense<0.000000e+00> : vector<16x256xf32>
    %5 = tpu.matmul %3, %4, %cst {dimension_numbers = #tpu.dot_dimension_numbers<[1], [0], [0], [1], [0, 0, 1, 1], [], []>} : vector<16x128xbf16>, vector<128x256xbf16>, vector<16x256xf32> -> vector<16x256xf32>
    %c0_4 = arith.constant 0 : index
    %c0_5 = arith.constant 0 : index
    %6 = vector.load %arg4[%c0_4, %c0_5] : memref<1x256xf32, #tpu.memory_space<vmem>>, vector<1x256xf32>
    %7 = vector.broadcast %6 : vector<1x256xf32> to vector<16x256xf32>
    %8 = arith.addf %5, %7 : vector<16x256xf32>
    %cst_6 = arith.constant 5.000000e-01 : f32
    %9 = vector.broadcast %cst_6 : f32 to vector<16x256xf32>
    %10 = arith.mulf %9, %8 : vector<16x256xf32>
    %cst_7 = arith.constant 0.707106769 : f32
    %11 = vector.broadcast %cst_7 : f32 to vector<16x256xf32>
    %12 = arith.mulf %8, %11 : vector<16x256xf32>
    %13 = math.absf %12 : vector<16x256xf32>
    %cst_8 = arith.constant 0.327591091 : f32
    %14 = vector.broadcast %cst_8 : f32 to vector<16x256xf32>
    %15 = arith.mulf %14, %13 : vector<16x256xf32>
    %cst_9 = arith.constant 1.000000e+00 : f32
    %16 = vector.broadcast %cst_9 : f32 to vector<16x256xf32>
    %17 = arith.addf %16, %15 : vector<16x256xf32>
    %18 = tpu.reciprocal %17 {approx = true} : vector<16x256xf32> -> vector<16x256xf32>
    %cst_10 = arith.constant 1.06140542 : f32
    %19 = vector.broadcast %cst_10 : f32 to vector<16x256xf32>
    %20 = arith.mulf %19, %18 : vector<16x256xf32>
    %cst_11 = arith.constant -1.45315206 : f32
    %21 = vector.broadcast %cst_11 : f32 to vector<16x256xf32>
    %22 = arith.addf %20, %21 : vector<16x256xf32>
    %23 = arith.mulf %22, %18 : vector<16x256xf32>
    %cst_12 = arith.constant 1.42141378 : f32
    %24 = vector.broadcast %cst_12 : f32 to vector<16x256xf32>
    %25 = arith.addf %23, %24 : vector<16x256xf32>
    %26 = arith.mulf %25, %18 : vector<16x256xf32>
    %cst_13 = arith.constant -0.284496725 : f32
    %27 = vector.broadcast %cst_13 : f32 to vector<16x256xf32>
    %28 = arith.addf %26, %27 : vector<16x256xf32>
    %29 = arith.mulf %28, %18 : vector<16x256xf32>
    %cst_14 = arith.constant 0.254829586 : f32
    %30 = vector.broadcast %cst_14 : f32 to vector<16x256xf32>
    %31 = arith.addf %29, %30 : vector<16x256xf32>
    %32 = arith.mulf %31, %18 : vector<16x256xf32>
    %cst_15 = arith.constant 0.000000e+00 : f32
    %33 = vector.broadcast %cst_15 : f32 to vector<16x256xf32>
    %34 = arith.subf %33, %13 : vector<16x256xf32>
    %35 = arith.mulf %34, %13 : vector<16x256xf32>
    %36 = math.exp %35 : vector<16x256xf32>
    %37 = arith.mulf %32, %36 : vector<16x256xf32>
    %cst_16 = arith.constant 1.000000e+00 : f32
    %38 = vector.broadcast %cst_16 : f32 to vector<16x256xf32>
    %39 = arith.subf %38, %37 : vector<16x256xf32>
    %cst_17 = arith.constant 0.000000e+00 : f32
    %40 = vector.broadcast %cst_17 : f32 to vector<16x256xf32>
    %41 = arith.cmpf oge, %12, %40 : vector<16x256xf32>
    %cst_18 = arith.constant 0.000000e+00 : f32
    %42 = vector.broadcast %cst_18 : f32 to vector<16x256xf32>
    %43 = arith.subf %42, %39 : vector<16x256xf32>
    %44 = arith.select %41, %39, %43 : vector<16x256xi1>, vector<16x256xf32>
    %cst_19 = arith.constant 1.000000e+00 : f32
    %45 = vector.broadcast %cst_19 : f32 to vector<16x256xf32>
    %46 = arith.addf %45, %44 : vector<16x256xf32>
    %47 = arith.mulf %10, %46 : vector<16x256xf32>
    %c0_20 = arith.constant 0 : index
    %c0_21 = arith.constant 0 : index
    %48 = vector.load %arg8[%c0_20, %c0_21] : memref<16x128xf32, #tpu.memory_space<vmem>>, vector<16x128xf32>
    %49 = arith.truncf %47 : vector<16x256xf32> to vector<16x256xbf16>
    %c0_22 = arith.constant 0 : index
    %c0_23 = arith.constant 0 : index
    %50 = vector.load %arg5[%c0_22, %c0_23] : memref<256x128xbf16, #tpu.memory_space<vmem>>, vector<256x128xbf16>
    %cst_24 = arith.constant dense<0.000000e+00> : vector<16x128xf32>
    %51 = tpu.matmul %49, %50, %cst_24 {dimension_numbers = #tpu.dot_dimension_numbers<[1], [0], [0], [1], [0, 0, 1, 1], [], []>} : vector<16x256xbf16>, vector<256x128xbf16>, vector<16x128xf32> -> vector<16x128xf32>
    %52 = arith.addf %48, %51 : vector<16x128xf32>
    %c0_25 = arith.constant 0 : index
    %c0_26 = arith.constant 0 : index
    %53 = vector.load %arg8[%c0_25, %c0_26] : memref<16x128xf32, #tpu.memory_space<vmem>>, vector<16x128xf32>
    tpu.vector_store %arg8[%c0_25, %c0_26], %52 {strides = array<i32>} : memref<16x128xf32, #tpu.memory_space<vmem>>, vector<16x128xf32>,
    %c0_i32_27 = arith.constant 0 : i32
    %54 = arith.cmpi eq, %arg1, %c0_i32_27 : i32
    %55 = arith.extui %54 : i1 to i32
    %c0_i32_28 = arith.constant 0 : i32
    %56 = arith.cmpi ne, %55, %c0_i32_28 : i32
    scf.if %56 {
      %c0_29 = arith.constant 0 : index
      %c0_30 = arith.constant 0 : index
      %57 = vector.load %arg8[%c0_29, %c0_30] : memref<16x128xf32, #tpu.memory_space<vmem>>, vector<16x128xf32>
      %c0_31 = arith.constant 0 : index
      %c0_32 = arith.constant 0 : index
      %58 = vector.load %arg6[%c0_31, %c0_32] : memref<1x128xf32, #tpu.memory_space<vmem>>, vector<1x128xf32>
      %59 = vector.broadcast %58 : vector<1x128xf32> to vector<16x128xf32>
      %60 = arith.addf %57, %59 : vector<16x128xf32>
      %c0_33 = arith.constant 0 : index
      %c0_34 = arith.constant 0 : index
      %61 = vector.load %arg7[%c0_33, %c0_34] : memref<16x128xf32, #tpu.memory_space<vmem>>, vector<16x128xf32>
      tpu.vector_store %arg7[%c0_33, %c0_34], %60 {strides = array<i32>} : memref<16x128xf32, #tpu.memory_space<vmem>>, vector<16x128xf32>,
    } else {
    }
    return
  }
  func.func @transform_0(%arg0: i32, %arg1: i32) -> (i32, i32) {
    %c0_i32 = arith.constant 0 : i32
    %c0_i32_0 = arith.constant 0 : i32
    return %arg0, %c0_i32 : i32, i32
  }
  func.func @transform_1(%arg0: i32, %arg1: i32) -> (i32, i32) {
    %c0_i32 = arith.constant 0 : i32
    %c0_i32_0 = arith.constant 0 : i32
    return %c0_i32, %arg1 : i32, i32
  }
  func.func @transform_2(%arg0: i32, %arg1: i32) -> (i32, i32) {
    %c0_i32 = arith.constant 0 : i32
    %c0_i32_0 = arith.constant 0 : i32
    return %c0_i32, %arg1 : i32, i32
  }
  func.func @transform_3(%arg0: i32, %arg1: i32) -> (i32, i32) {
    %c0_i32 = arith.constant 0 : i32
    %c0_i32_0 = arith.constant 0 : i32
    return %arg1, %c0_i32 : i32, i32
  }
  func.func @transform_4(%arg0: i32, %arg1: i32) -> (i32, i32) {
    %c0_i32 = arith.constant 0 : i32
    %c0_i32_0 = arith.constant 0 : i32
    %c0_i32_1 = arith.constant 0 : i32
    return %c0_i32, %c0_i32_0 : i32, i32
  }
  func.func @transform_5(%arg0: i32, %arg1: i32) -> (i32, i32) {
    %c0_i32 = arith.constant 0 : i32
    %c0_i32_0 = arith.constant 0 : i32
    return %arg0, %c0_i32 : i32, i32
  }
}

</mosaic_0001>

<bundles_post_ra>
// kernel: feedforward.1
= control target key start
LH: loop header
LB: loop body
LE: loop exit
PB: predicated region body
PF: predicated region fallthrough
CT: control target
= control target key end

     0   :  { %10 = vsyncpa [#allocation4], 0  ;;  %s1440_s0 = inlined_call_operand.vmem [shape: bf16[32,128], index: 0, kind: input, shape index: {}]   ;;  %s1441_s1 = inlined_call_operand.vmem [shape: bf16[128,256], index: 1, kind: input, shape index: {}]   ;;  %s1442_s2 = inlined_call_operand.vmem [shape: f32[1,256], index: 2, kind: input, shape index: {}]   ;;  %s1443_s3 = inlined_call_operand.vmem [shape: bf16[256,128], index: 3, kind: input, shape index: {}]   ;;  %s1444_s4 = inlined_call_operand.vmem [shape: f32[1,128], index: 4, kind: input, shape index: {}]   ;;  %s1445_s5 = inlined_call_operand.hbm [shape: f32[32,128], index: 5, kind: output, shape index: {}]  }
   0x1   :  { %12 = vsyncpa [#allocation4 + $0x1], 0  ;;  %s1192_s18 = smov 0   ;;  %s1194_s19 = smov 0  }
   0x2   :  { %s1196_s20 = smov 0   ;;  %s1198_s21 = smov 0  }
   0x3   :  { %s1200_s22 = smov 0   ;;  %s1202_s23 = smov 0  }
   0x4 LB: > { %s890_s24 = sadd.s32 4294967295, %s1156_s23   ;;  %s891_s25 = sadd.s32 4294967294, %s1156_s23   ;;  %s1156_s23 = sphi %s1202_s23, %s18_s23   ;;  %s1152_s22 = sphi %s1200_s22, %s1452_s22   ;;  %s1148_s21 = sphi %s1198_s21, %s1451_s21   ;;  %s1144_s20 = sphi %s1196_s20, %s1450_s20   ;;  %s1140_s19 = sphi %s1194_s19, %s1449_s19   ;;  %s1136_s18 = sphi %s1192_s18, %s1448_s18  }
   0x5   : > { %s30_s26 = sadd.s32 1, %s1152_s22  ;;  %s162_s27 = sadd.s32 1, %s1144_s20 }
   0x6   : > { %p32_p0 = scmp.ge.s32.totalorder %s30_s26, 2  ;;  %p172_p1 = scmp.ne.s32.totalorder %s1144_s20, %s1140_s19 }
   0x7   : > { %p173_p2 = scmp.eq.s32.totalorder %s890_s24, 1  ;;  %p178_p3 = scmp.ne.s32.totalorder %s1140_s19, %s1136_s18 }
   0x8   : > { %s1454_s26 = smov (%p32_p0, %s30_s26), 0  ;;  %p179_p5 = scmp.eq.s32.totalorder %s891_s25, 1 }
   0x9   : > { %p1232_p4 = por %p173_p2, %p172_p1  ;;  %s159_s29 = ssub.s32 %s1152_s22, %s1454_s26 }
   0xa   : > { %p897_p6 = scmp.ge.s32.totalorder %s1156_s23, 1  ;;  %p160_p7 = scmp.eq.s32.totalorder %s159_s29, 0 }
   0xb   : > { %p1239_p8 = por %p179_p5, %p178_p3  ;;  %p235_p9 = scmp.lt.s32.totalorder %s1156_s23, 3 }
   0xc   : > { %s1245_s6 = scalar_select %p160_p7, %s1144_s20, %s162_s27  }
   0xd   : > { %p236_p10 = pnand %p897_p6, %p235_p9 }
   0xe   : > { %v1021_v0 = vld [vmem:[%s1441_s1 + $0x4] ss:$8 sps:$4 sm:$0xff] (!%p236_p10)   ;;  %s899_s9 = sshll.u32 (!%p236_p10), %s1148_s21, 1  ;;  %v1023_v1 = vld [vmem:[%s1441_s1] ss:$8 sps:$4 sm:$0xff] (!%p236_p10)   ;;  %v1158_v2 = vmov (!%p236_p10), 0   ;;  %v328_v34 = vlaneseq (!%p236_p10) }
   0xf   : > { %239 = sbr.rel (%p236_p10) target bundleno = 549 (0x225), region = 40  ;;  %456 = vmatprep.mubr.bf16.mxu0 (!%p236_p10), %v1158_v2  ;;  %p278_p11 = scmp.lt.s32.totalorder (!%p236_p10), %s899_s9, 3  ;;  %424 = vmatprep.subr.bf16.mxu0 (!%p236_p10), %v1021_v0  ;;  %v1024_v3 = vld [vmem:[%s1441_s1 + $0x14] ss:$8 sps:$4 sm:$0xff] (!%p236_p10)   ;;  %v1026_v4 = vld [vmem:[%s1441_s1 + $0x10] ss:$8 sps:$4 sm:$0xff] (!%p236_p10)  }
  0x10   : > { %425 = vmatpush1.bf16.msra.mxu0 (!%p236_p10), %v1023_v1  ;;  %v1027_v5 = vld [vmem:[%s1441_s1 + $0x24] ss:$8 sps:$4 sm:$0xff] (!%p236_p10)   ;;  %v1029_v6 = vld [vmem:[%s1441_s1 + $0x20] ss:$8 sps:$4 sm:$0xff] (!%p236_p10)   ;;  %v1030_v7 = vld [vmem:[%s1441_s1 + $0x34] ss:$8 sps:$4 sm:$0xff] (!%p236_p10)  }
  0x11   : > { %426 = vmatprep.subr.bf16.mxu0 (!%p236_p10), %v1024_v3  ;;  %v1032_v8 = vld [vmem:[%s1441_s1 + $0x30] ss:$8 sps:$4 sm:$0xff] (!%p236_p10)   ;;  %v1033_v9 = vld [vmem:[%s1441_s1 + $0x44] ss:$8 sps:$4 sm:$0xff] (!%p236_p10)   ;;  %v1035_v10 = vld [vmem:[%s1441_s1 + $0x40] ss:$8 sps:$4 sm:$0xff] (!%p236_p10)  }
  0x12   : > { %v1036_v11 = vld [vmem:[%s1441_s1 + $0x54] ss:$8 sps:$4 sm:$0xff] (!%p236_p10)   ;;  %v1038_v12 = vld [vmem:[%s1441_s1 + $0x50] ss:$8 sps:$4 sm:$0xff] (!%p236_p10)   ;;  %v1039_v13 = vld [vmem:[%s1441_s1 + $0x64] ss:$8 sps:$4 sm:$0xff] (!%p236_p10)  }
  0x13   : > { %v1041_v14 = vld [vmem:[%s1441_s1 + $0x60] ss:$8 sps:$4 sm:$0xff] (!%p236_p10)   ;;  %v1042_v15 = vld [vmem:[%s1441_s1 + $0x74] ss:$8 sps:$4 sm:$0xff] (!%p236_p10)   ;;  %v1044_v16 = vld [vmem:[%s1441_s1 + $0x70] ss:$8 sps:$4 sm:$0xff] (!%p236_p10)  }
  0x14   : > { %427 = vmatpush1.bf16.msra.mxu0 (!%p236_p10), %v1026_v4  ;;  %v1046_v18 = vld [vmem:[%s1443_s3 + $0x40] sm:$0xff] (!%p236_p10)   ;;  %v1048_v20 = vld [vmem:[%s1443_s3 + $0x48] sm:$0xff] (!%p236_p10)   ;;  %v1050_v22 = vld [vmem:[%s1443_s3 + $0x50] sm:$0xff] (!%p236_p10)   ;;  %v329_v35 = vshrl.u32 (!%p236_p10), %v328_v34, 7  ;;  %s940_s10 = sshll.u32 (!%p236_p10), %s1148_s21, 8  ;;  %s1159_s21 = smov (!%p236_p10), [#allocation3]  }
  0x15   : > { %428 = vmatprep.subr.bf16.mxu0 (!%p236_p10), %v1027_v5  ;;  %v1047_v19 = vld [vmem:[%s1443_s3] sm:$0xff] (!%p236_p10)   ;;  %941 = vmatprep.subr.bf16.mxu1 (!%p236_p10), %v1046_v18  ;;  %v1049_v21 = vld [vmem:[%s1443_s3 + $0x8] sm:$0xff] (!%p236_p10)   ;;  %v1051_v23 = vld [vmem:[%s1443_s3 + $0x10] sm:$0xff] (!%p236_p10)   ;;  %s1082_s16 = sshll.u32 (!%p236_p10), %s1159_s21, 4  ;;  %s1083_s16 = int_to_ptr.vmem [resolvable:$false] %s1082_s16 }
  0x16   : > { %s1456_s9 = smov (!%p278_p11, %s899_s9), 3  ;;  %942 = vmatpush3.bf16.msra.mxu1 %v1047_v19  ;;  %v1052_v24 = vld [vmem:[%s1443_s3 + $0x58] sm:$0xff]   ;;  %v1054_v26 = vld [vmem:[%s1443_s3 + $0x60] sm:$0xff]   ;;  %v1056_v28 = vld [vmem:[%s1443_s3 + $0x68] sm:$0xff]   ;;  %v330_v36 = vsub.s32 0, %v329_v35  ;;  %v334_v38 = vsub.s32 1, %v329_v35 }
  0x17   : > { %s900_s24 = sshll.u32 %s1456_s9, 2  ;;  %943 = vmatprep.subr.bf16.mxu1 %v1048_v20  ;;  %v1053_v25 = vld [vmem:[%s1443_s3 + $0x18] sm:$0xff]   ;;  %v1055_v27 = vld [vmem:[%s1443_s3 + $0x20] sm:$0xff]   ;;  %v1057_v29 = vld [vmem:[%s1443_s3 + $0x28] sm:$0xff]   ;;  %s1392_s9 = scalar_lea.hbm %s1445_s5, %s940_s10 }
  0x18   : > { %s281_s11 = scalar_lea.vmem %s1440_s0, %s900_s24  ;;  %429 = vmatpush1.bf16.msra.mxu0 %v1029_v6  ;;  %v1058_v30 = vld [vmem:[%s1443_s3 + $0x70] sm:$0xff]   ;;  %v1060_v32 = vld [vmem:[%s1443_s3 + $0x78] sm:$0xff]   ;;  %v326_v37 = vld [vmem:[%s1442_s2] sm:$0x3]  ;;  %s274_s24 = sand.u32 1, %s1140_s19  }
  0x19   : > { %430 = vmatprep.subr.bf16.mxu0 %v1030_v7  ;;  %v1045_v17 = vld [vmem:[%s281_s11] sm:$0xff]   ;;  %v1059_v31 = vld [vmem:[%s1443_s3 + $0x30] sm:$0xff]   ;;  %v1061_v33 = vld [vmem:[%s1443_s3 + $0x38] sm:$0xff]   ;;  %v331_v39 = vrot.slane %v326_v37, %v330_v36  ;;  %v335_v40 = vrot.slane %v326_v37, %v334_v38  ;;  %s898_s27 = sshll.u32 %s274_s24, 4  ;;  %s1394_s14 = scalar_lea.sflag [#allocation4], %s274_s24 }
  0x1a   : > { %944 = vmatpush3.bf16.msra.mxu1 %v1049_v21  ;;  %s276_s11 = scalar_lea.vmem [#allocation3], %s898_s27  ;;  %s1084_s17 = scalar_lea.vmem %s1083_s16, 512 }
  0x1b   : > { %945 = vmatprep.subr.bf16.mxu1 %v1050_v22  ;;  %s778_s8 = sshll.u32 %s276_s11, 4  ;;  %s1387_s8 = int_to_ptr.vmem [resolvable:$true] %s778_s8 }
  0x1c   : > { %431 = vmatpush1.bf16.msra.mxu0 %v1032_v8  ;;  %s1078_s15 = scalar_lea.vmem %s1387_s8, 256  ;;  %p1085_p1 = scmp.lt.s32.totalorder %s1387_s8, %s1083_s16 }
  0x1d   : > { %432 = vmatprep.subr.bf16.mxu0 %v1033_v9  ;;  %p1079_p12 = scmp.ne.s32.totalorder %s1387_s8, %s1078_s15  ;;  %p1086_p2 = scmp.lt.s32.totalorder %s1084_s17, %s1078_s15 }
  0x1e   : > { %946 = vmatpush3.bf16.msra.mxu1 %v1051_v23 }
  0x1f   : > { %947 = vmatprep.subr.bf16.mxu1 %v1052_v24  ;;  %p1080_p13 = pnand %p1079_p12, %p1232_p4  ;;  %p1087_p3 = por %p1086_p2, %p1085_p1 }
  0x20   : > { %433 = vmatpush1.bf16.msra.mxu0 %v1035_v10 }
  0x21   : > { %434 = vmatprep.subr.bf16.mxu0 %v1036_v11  ;;  %p1081_p0 = pneg %p1080_p13 }
  0x22   : > { %948 = vmatpush3.bf16.msra.mxu1 %v1053_v25 }
  0x23   : > { %949 = vmatprep.subr.bf16.mxu1 %v1054_v26  ;;  %p1088_p5 = pnand %p1087_p3, %p1081_p0 }
  0x24   : > { %435 = vmatpush1.bf16.msra.mxu0 %v1038_v12 }
  0x25   : > { %436 = vmatprep.subr.bf16.mxu0 %v1039_v13 }
  0x26   : > { %950 = vmatpush3.bf16.msra.mxu1 %v1055_v27 }
  0x27   : > { %951 = vmatprep.subr.bf16.mxu1 %v1056_v28 }
  0x28   : > { %437 = vmatpush1.bf16.msra.mxu0 %v1041_v14 }
  0x29   : > { %438 = vmatprep.subr.bf16.mxu0 %v1042_v15 }
  0x2a   : > { %952 = vmatpush3.bf16.msra.mxu1 %v1057_v29 }
  0x2b   : > { %953 = vmatprep.subr.bf16.mxu1 %v1058_v30 }
  0x2c   : > { %439 = vmatpush1.bf16.msra.mxu0 %v1044_v16 }
  0x2e   : > { %954 = vmatpush3.bf16.msra.mxu1 %v1059_v31 }
  0x2f   : > { %457 = vmatmul.mubr.bf16.vlgmr.msra.gmra.mrb[0].mxu0 %v1045_v17  ;;  %955 = vmatprep.subr.bf16.mxu1 %v1060_v32 }
  0x32   : > { %956 = vmatpush3.bf16.msra.mxu1 %v1061_v33 }
 0x102   : > { %v458_v41 = vpop.f32.mrb[0].mxu0 }
 0x103   : > { %v1350_v42 = vadd.f32 %v458_v41, %v331_v39  ;;  %v460_v43 = vpop.f32.mrb[1].mxu0 }
 0x104   : > { %v1352_v44 = vadd.f32 %v460_v43, %v335_v40  ;;  %v462_v45 = vpop.f32.mrb[2].mxu0 }
 0x105   : > { %v1355_v46 = vmul.f32 0.70710677, %v1350_v42  ;;  %v1357_v47 = vadd.f32 %v462_v45, %v331_v39  ;;  %v464_v48 = vpop.f32.mrb[3].mxu0 }
 0x106   : > { %v1360_v49 = vmul.f32 0.70710677, %v1352_v44  ;;  %v1362_v50 = vadd.f32 %v464_v48, %v335_v40 }
 0x107   : > { %v475_v51 = vand.u32 2147483647, %v1355_v46  ;;  %v1366_v52 = vmul.f32 0.70710677, %v1357_v47  ;;  %vm551_vm0 = vcmp.ge.f32.partialorder %v1355_v46, 0.0 }
 0x108   : > { %v476_v53 = vand.u32 2147483647, %v1360_v49  ;;  %v1370_v54 = vmul.f32 0.70710677, %v1362_v50  ;;  %vm552_vm1 = vcmp.ge.f32.partialorder %v1360_v49, 0.0 }
 0x109   : > { %v479_v55 = vmul.f32 0.3275911, %v475_v51  ;;  %v477_v56 = vand.u32 2147483647, %v1366_v52  ;;  %v527_v1 = vsub.f32 0.0, %v475_v51  ;;  %vm553_vm2 = vcmp.ge.f32.partialorder %v1366_v52, 0.0 }
 0x10a   : > { %v480_v57 = vmul.f32 0.3275911, %v476_v53  ;;  %v478_v58 = vand.u32 2147483647, %v1370_v54  ;;  %v528_v2 = vsub.f32 0.0, %v476_v53  ;;  %vm554_vm3 = vcmp.ge.f32.partialorder %v1370_v54, 0.0 }
 0x10b   : > { %v483_v59 = vadd.f32 1.0, %v479_v55  ;;  %v481_v60 = vmul.f32 0.3275911, %v477_v56  ;;  %v531_v4 = vmul.f32 %v527_v1, %v475_v51  ;;  %v529_v5 = vsub.f32 0.0, %v477_v56 }
 0x10c   : > { %v484_v61 = vadd.f32 1.0, %v480_v57  ;;  %v482_v62 = vmul.f32 0.3275911, %v478_v58  ;;  %v532_v8 = vmul.f32 %v528_v2, %v476_v53  ;;  %v530_v9 = vsub.f32 0.0, %v478_v58 }
 0x10d   : > { %1062 = vrcp.f32 %v483_v59  ;;  %v485_v63 = vadd.f32 1.0, %v481_v60  ;;  %v535_v13 = vmul.f32 1.442695, %v531_v4  ;;  %v533_v14 = vmul.f32 %v529_v5, %v477_v56 }
 0x10e   : > { %1064 = vrcp.f32 %v484_v61  ;;  %v486_v0 = vadd.f32 1.0, %v482_v62  ;;  %v537_v17 = vmul.f32 1.442695, %v532_v8  ;;  %v534_v20 = vmul.f32 %v530_v9, %v478_v58 }
 0x10f   : > { %1066 = vrcp.f32 %v485_v63  ;;  %v539_v25 = vmul.f32 1.442695, %v533_v14 }
 0x110   : > { %1068 = vrcp.f32 %v486_v0  ;;  %v541_v30 = vmul.f32 1.442695, %v534_v20  ;;  %v468_v20 = vmul.f32 0.5, %v1352_v44  ;;  %v934_v44 = vld [vmem:[%s1444_s4] ss:$0 sm:$0xff] }
 0x111   : > { %1070 = vpow2.f32 %v535_v13 }
 0x112   : > { %1072 = vpow2.f32 %v537_v17 }
 0x113   : > { %1074 = vpow2.f32 %v539_v25 }
 0x114   : > { %1076 = vpow2.f32 %v541_v30 }
 0x117   : > { %v1063_v3 = vpop.eup %1062 }
 0x118   : > { %v1065_v6 = vpop.eup %1064  ;;  %v491_v7 = vmul.f32 1.0614054, %v1063_v3 }
 0x119   : > { %v492_v10 = vmul.f32 1.0614054, %v1065_v6  ;;  %v1067_v12 = vpop.eup %1066 }
 0x11a   : > { %v495_v11 = vadd.f32 -1.4531521, %v491_v7  ;;  %v493_v18 = vmul.f32 1.0614054, %v1067_v12  ;;  %v1069_v19 = vpop.eup %1068 }
 0x11b   : > { %v496_v15 = vadd.f32 -1.4531521, %v492_v10  ;;  %v494_v24 = vmul.f32 1.0614054, %v1069_v19  ;;  %v1071_v55 = vpop.eup %1070 }
 0x11c   : > { %v499_v16 = vmul.f32 %v1063_v3, %v495_v11  ;;  %v497_v23 = vadd.f32 -1.4531521, %v493_v18  ;;  %v1073_v57 = vpop.eup %1072  ;;  %v469_v18 = vmul.f32 0.5, %v1357_v47 }
 0x11d   : > { %v500_v21 = vmul.f32 %v1065_v6, %v496_v15  ;;  %v498_v29 = vadd.f32 -1.4531521, %v494_v24  ;;  %v1075_v1 = vpop.eup %1074 }
 0x11e   : > { %v503_v22 = vadd.f32 1.4214138, %v499_v16  ;;  %v501_v28 = vmul.f32 %v1067_v12, %v497_v23  ;;  %v1077_v8 = vpop.eup %1076  ;;  %v470_v23 = vmul.f32 0.5, %v1362_v50 }
 0x11f   : > { %v504_v26 = vadd.f32 1.4214138, %v500_v21  ;;  %v502_v34 = vmul.f32 %v1069_v19, %v498_v29 }
 0x120   : > { %v507_v27 = vmul.f32 %v1063_v3, %v503_v22  ;;  %v505_v33 = vadd.f32 1.4214138, %v501_v28 }
 0x121   : > { %v508_v31 = vmul.f32 %v1065_v6, %v504_v26  ;;  %v506_v38 = vadd.f32 1.4214138, %v502_v34 }
 0x122   : > { %v511_v32 = vadd.f32 -0.28449672, %v507_v27  ;;  %v509_v37 = vmul.f32 %v1067_v12, %v505_v33 }
 0x123   : > { %v512_v35 = vadd.f32 -0.28449672, %v508_v31  ;;  %v510_v43 = vmul.f32 %v1069_v19, %v506_v38 }
 0x124   : > { %v515_v36 = vmul.f32 %v1063_v3, %v511_v32  ;;  %v513_v41 = vadd.f32 -0.28449672, %v509_v37 }
 0x125   : > { %v516_v39 = vmul.f32 %v1065_v6, %v512_v35  ;;  %v514_v53 = vadd.f32 -0.28449672, %v510_v43 }
 0x126   : > { %v519_v40 = vadd.f32 0.2548296, %v515_v36  ;;  %v517_v51 = vmul.f32 %v1067_v12, %v513_v41 }
 0x127   : > { %v520_v45 = vadd.f32 0.2548296, %v516_v39  ;;  %v518_v60 = vmul.f32 %v1069_v19, %v514_v53 }
 0x128   : > { %v523_v48 = vmul.f32 %v1063_v3, %v519_v40  ;;  %v521_v59 = vadd.f32 0.2548296, %v517_v51 }
 0x129   : > { %v524_v56 = vmul.f32 %v1065_v6, %v520_v45  ;;  %v522_v0 = vadd.f32 0.2548296, %v518_v60 }
 0x12a   : > { %v543_v58 = vmul.f32 %v1071_v55, %v523_v48  ;;  %v525_v63 = vmul.f32 %v1067_v12, %v521_v59  ;;  %v467_v12 = vmul.f32 0.5, %v1350_v42 }
 0x12b   : > { %v544_v61 = vmul.f32 %v1073_v57, %v524_v56  ;;  %v526_v7 = vmul.f32 %v1069_v19, %v522_v0 }
 0x12c   : > { %v547_v62 = vsub.f32 1.0, %v543_v58  ;;  %v545_v5 = vmul.f32 %v1075_v1, %v525_v63 }
 0x12d   : > { %v548_v2 = vsub.f32 1.0, %v544_v61  ;;  %v546_v6 = vmul.f32 %v1077_v8, %v526_v7 }
 0x12e   : > { %v555_v4 = vsub.f32 0.0, %v547_v62  ;;  %v549_v10 = vsub.f32 1.0, %v545_v5 }
 0x12f   : > { %v556_v3 = vsub.f32 0.0, %v548_v2  ;;  %v550_v13 = vsub.f32 1.0, %v546_v6 }
 0x130   : > { %v559_v9 = vsel %vm551_vm0, %v547_v62, %v555_v4  ;;  %v557_v11 = vsub.f32 0.0, %v549_v10 }
 0x131   : > { %v560_v14 = vsel %vm552_vm1, %v548_v2, %v556_v3  ;;  %v563_v15 = vadd.f32 1.0, %v559_v9  ;;  %v558_v17 = vsub.f32 0.0, %v550_v13 }
 0x132   : > { %v561_v16 = vsel %vm553_vm2, %v549_v10, %v557_v11  ;;  %v564_v19 = vadd.f32 1.0, %v560_v14 }
 0x133   : > { %v565_v46 = vadd.f32 1.0, %v561_v16  ;;  %v562_v49 = vsel %vm554_vm3, %v550_v13, %v558_v17  ;;  %v567_v21 = vmul.f32 %v563_v15, %v467_v12 }
 0x134   : > { %v566_v24 = vadd.f32 1.0, %v562_v49  ;;  %v568_v52 = vmul.f32 %v564_v19, %v468_v20 }
 0x135   : > { %v569_v22 = vmul.f32 %v565_v46, %v469_v18 }
 0x136   : > { %v570_v42 = vmul.f32 %v566_v24, %v470_v23 }
 0x137   : > { %v573_v25 = vpack.c.bf16 %v569_v22, %v567_v21 }
 0x138   : > { %v574_v26 = vpack.c.bf16 %v570_v42, %v568_v52 }
 0x13a   : > { %735 = vmatprep.mubr.bf16.mxu1 %v574_v26 }
 0x13b   : > { %736 = vmatmul.mubr.bf16.vlgmr.msra.gmra.mrb[0].mxu1 %v573_v25 }
 0x20e   : > { %v957_v47 = vpop.f32.mrb[0].mxu1 }
 0x20f   : > { %v958_v54 = vpop.f32.mrb[1].mxu1 }
 0x210   : > { %v959_v27 = vadd.f32 %v958_v54, %v957_v47  ;;  %v960_v50 = vpop.f32.mrb[2].mxu1 }
 0x211   : > { %v961_v28 = vpop.f32.mrb[3].mxu1 }
 0x212   : > { %v760_v29 = vadd.f32 %v959_v27, %v934_v44  ;;  %v962_v30 = vadd.f32 %v961_v28, %v960_v50 }
 0x214   : > { %762 = vst [vmem:[%s276_s11] sm:$0xff] %v760_v29  ;;  %v761_v31 = vadd.f32 %v962_v30, %v934_v44 }
 0x216   : > { %763 = vst [vmem:[%s276_s11 + $0x8] sm:$0xff] %v761_v31 }
 0x217   : > { %1091 = shalt.err (!%p1088_p5)
}
 0x218   : > { %s1092_s25 = scalar_lea.hbm %s1392_s9, 256  ;;  %s1096_s29 = scalar_lea.hbm %s1445_s5, 512 }
 0x219   : > { %p1093_p6 = scmp.ne.s32.totalorder %s1392_s9, %s1092_s25  ;;  %p1097_p10 = scmp.lt.u32.totalorder %s1392_s9, %s1445_s5 }
 0x21a   : > { %p1098_p11 = scmp.lt.u32.totalorder %s1096_s29, %s1092_s25  ;;  %p1100_p13 = scmp.lt.u32.totalorder %s1092_s25, %s1392_s9 }
 0x21b   : > { %p1094_p7 = pnand %p1093_p6, %p1232_p4 }
 0x21c   : > { %p1099_p12 = por %p1098_p11, %p1097_p10 }
 0x21d   : > { %p1095_p9 = pneg %p1094_p7 }
 0x21e   : > { %p1101_p0 = por %p1100_p13, %p1099_p12 }
 0x220   : > { %p1102_p1 = pnand %p1101_p0, %p1095_p9 }
 0x222   : > { %1105 = shalt.err (!%p1102_p1)
}
 0x223   : > { %s1160_s10 = smov 128   ;;  %s1161_s12 = smov 8  }
 0x224   : > { %963 = dma.vmem_to_hbm [thread:$0]  (%p1232_p4), %s1387_s8, 256, %s1392_s9, %s1394_s14, %s1160_s10, %s1160_s10, %s1161_s12  }
 0x225 PF: > { %p969_p2 = scmp.ge.s32.totalorder %s1156_s23, 2  ;;  %s793_s13 = sand.u32 1, %s1136_s18  }
 0x226   : > { %s794_s15 = scalar_lea.sflag [#allocation4], %s793_s13 }
 0x227   : > { %p966_p3 = pnand %p969_p2, %p1239_p8 }
 0x229   : > { %1131 = dma.done.wait (!%p966_p3), %s794_s15, 256  }
 0x22a   : > { %1133 = vsyncadd (!%p966_p3), %s794_s15, 4294967040  ;;  %s18_s23 = sadd.s32 1, %s1156_s23   ;;  %s1448_s18 = smov %s1140_s19 }
 0x22b   : > { %p15_p5 = scmp.ge.s32.totalorder %s18_s23, 4   ;;  %s1449_s19 = smov %s1144_s20 }
 0x22c   : > { %s1450_s20 = smov %s1245_s6  ;;  %s1451_s21 = smov %s1152_s22 }
 0x22d   : > { %s1452_s22 = smov %s1454_s26  ;;  %17 = sbr.rel (!%p15_p5) target bundleno = 4 (0x4), region = 92 }
 0x234   :  { %799 = vsyncpa [#allocation4], 1 }
 0x235   :  { %801 = vsyncpa [#allocation4 + $0x1], 1 }

</bundles_post_ra>
